<compile_context>
chip_gen: v7x
topology: tpu7x:2x2x1
jax: 0.10.0
libtpu: 0.0.40
codegen_flags: <defaults>
</compile_context>

<pallas_src>
import functools

import jax
import jax.numpy as jnp
from jax.experimental import pallas as pl
from jax.experimental.pallas import tpu as pltpu


def _round_up(v, m):
    return ((v + m - 1) // m) * m


_VMEM_CAPACITY = None


def _vmem_capacity_bytes():
    """Per-core VMEM capacity (v5e/v6e: 128 MiB, v7x: 64 MiB); cached, with a safe fallback."""
    global _VMEM_CAPACITY
    if _VMEM_CAPACITY is None:
        try:
            _VMEM_CAPACITY = int(pltpu.get_tpu_info().vmem_capacity_bytes)
        except Exception:
            _VMEM_CAPACITY = 64 << 20
    return _VMEM_CAPACITY


# -----------------------------------------------------------------------------
# Kernel
# -----------------------------------------------------------------------------
def _mlp_kernel(x_ref, w1_ref, b1_ref, w2_ref, b2_ref, w3_ref, b3_ref, o_ref):
    # Layer 1: Linear + ReLU (f32 accumulation on the MXU; bias/ReLU in f32)
    h = jnp.dot(x_ref[...], w1_ref[...], preferred_element_type=jnp.float32)
    h = jnp.maximum(h + b1_ref[...], 0.0)
    # Layer 2: Linear + ReLU
    h = jnp.dot(h.astype(w2_ref.dtype), w2_ref[...], preferred_element_type=jnp.float32)
    h = jnp.maximum(h + b2_ref[...], 0.0)
    # Output layer: Linear (no nonlinearity)
    out = jnp.dot(h.astype(w3_ref.dtype), w3_ref[...], preferred_element_type=jnp.float32)
    o_ref[...] = (out + b3_ref[...]).astype(o_ref.dtype)


# -----------------------------------------------------------------------------
# One-time parameter preparation (hoisted out of the hot path)
# -----------------------------------------------------------------------------
def prepare_fc_params(params, compute_dtype=jnp.float32):
    """Transpose to [in, out], lane-pad the output dim to 128, and cast ONCE.

    params: dict with w1 [H1, Din], b1 [H1], w2 [H2, H1], b2 [H2],
            w3 [Dout, H2], b3 [Dout]   (PyTorch nn.Linear convention)
    Returns a dict of device arrays ready for the Pallas kernel, plus the
    (static) unpadded output width under "dim_output".
    """
    w1, b1 = params["w1"], params["b1"]
    w2, b2 = params["w2"], params["b2"]
    w3, b3 = params["w3"], params["b3"]
    dout = int(w3.shape[0])
    dout_p = _round_up(max(dout, 1), 128)

    prepared = {
        "w1t": jnp.asarray(w1.T, compute_dtype),                                  # [Din, H1]
        "w2t": jnp.asarray(w2.T, compute_dtype),                                  # [H1,  H2]
        "w3t": jnp.pad(jnp.asarray(w3.T, compute_dtype),
                       ((0, 0), (0, dout_p - dout))),                             # [H2, Dout_p]
        # Biases stay f32: bias-add and ReLU happen in f32 regardless of compute_dtype.
        "b1": jnp.asarray(b1, jnp.float32)[None, :],                              # [1, H1]
        "b2": jnp.asarray(b2, jnp.float32)[None, :],                              # [1, H2]
        "b3": jnp.pad(jnp.asarray(b3, jnp.float32), (0, dout_p - dout))[None, :],  # [1, Dout_p]
        "dim_output": dout,                                                        # static int
    }
    return prepared


# -----------------------------------------------------------------------------
# Forward (hot path)
# -----------------------------------------------------------------------------
@functools.partial(jax.jit,
                   static_argnames=("dim_output", "batch_tile", "single_buffer_weights"))
def _fc_forward_impl(x, w1t, b1, w2t, b2, w3t, b3, *,
                     dim_output, batch_tile, single_buffer_weights):
    B, din = x.shape
    h1 = w1t.shape[1]
    h2 = w2t.shape[1]
    dout_p = w3t.shape[1]
    w_dtype = w1t.dtype
    w_item = jnp.dtype(w_dtype).itemsize

    # Only the batch axis ever needs padding in the hot path.
    B_p = _round_up(B, batch_tile)
    x_p = x.astype(w_dtype)
    if B_p != B:
        x_p = jnp.pad(x_p, ((0, B_p - B), (0, 0)))

    # Grid-invariant weight/bias blocks: single-buffer only when they are a meaningful
    # fraction of VMEM (near the residency limit); otherwise default double buffering.
    if single_buffer_weights:
        def const_spec(shape):
            return pl.BlockSpec(shape, lambda i: (0, 0), pipeline_mode=pl.Buffered(1))
        weight_bufs = 1
    else:
        def const_spec(shape):
            return pl.BlockSpec(shape, lambda i: (0, 0))
        weight_bufs = 2

    grid = (B_p // batch_tile,)

    # VMEM budget: resident weights (+ f32 biases), double-buffered x/out tiles, f32 activations.
    weight_bytes = (din * h1 + h1 * h2 + h2 * dout_p) * w_item + (h1 + h2 + dout_p) * 4
    io_bytes = 2 * batch_tile * (din * w_item + dout_p * 4)
    act_bytes = 2 * batch_tile * max(h1, h2) * 4
    vmem_needed = weight_bytes * weight_bufs + io_bytes + act_bytes
    vmem_cap = max(int(0.85 * _vmem_capacity_bytes()), 32 << 20)   # headroom on v7x's 64 MiB
    vmem_limit = int(min(max(2 * vmem_needed + (4 << 20), 32 << 20), vmem_cap))

    out = pl.pallas_call(
        _mlp_kernel,
        out_shape=jax.ShapeDtypeStruct((B_p, dout_p), jnp.float32),
        grid_spec=pltpu.PrefetchScalarGridSpec(
            num_scalar_prefetch=0,
            grid=grid,
            in_specs=[
                # x tile: last dim equals the full array dim (no lane padding needed for loads).
                pl.BlockSpec((batch_tile, din), lambda i: (i, 0)),
                const_spec((din, h1)),     # W1^T (resident)
                const_spec((1, h1)),       # b1 (f32)
                const_spec((h1, h2)),      # W2^T
                const_spec((1, h2)),       # b2 (f32)
                const_spec((h2, dout_p)),  # W3^T (lane-padded)
                const_spec((1, dout_p)),   # b3 (f32, lane-padded)
            ],
            # Output is lane-padded to a 128 multiple -> unmasked stores.
            out_specs=pl.BlockSpec((batch_tile, dout_p), lambda i: (i, 0)),
        ),
        compiler_params=pltpu.CompilerParams(
            dimension_semantics=("parallel",),
            vmem_limit_bytes=vmem_limit,
        ),
    )(x_p, w1t, b1, w2t, b2, w3t, b3)

    return out[:B, :dim_output]


def fc_network_forward(x, prepared, *, batch_tile=None):
    """Forward pass of FCNetwork. `prepared` comes from prepare_fc_params() (one-time prep).

    x: [B, dim_input] (any float dtype; matmuls run in the prepared compute dtype).
    """
    w1t, b1 = prepared["w1t"], prepared["b1"]
    w2t, b2 = prepared["w2t"], prepared["b2"]
    w3t, b3 = prepared["w3t"], prepared["b3"]
    dim_output = int(prepared["dim_output"])

    B = x.shape[0]
    w_dtype = w1t.dtype
    itemsize = jnp.dtype(w_dtype).itemsize
    sublane = 8 * max(1, 4 // itemsize)        # 8 rows f32, 16 bf16, 32 int8 per packed sublane

    if batch_tile is None:
        if B <= 512:
            # Single grid step for small/medium batches, rounded to the dtype's sublane count.
            batch_tile = _round_up(max(B, sublane), sublane)
        else:
            # Multiple of 128 (feeds the MXU on v5e/v6e/v7x); grid >= 2 so v7x megacore shards,
            # and a 512-row tile amortizes the ~0.35 us per-grid-step overhead.
            batch_tile = 512

    din, h1 = w1t.shape
    h2 = w2t.shape[1]
    dout_p = w3t.shape[1]
    resident_weight_bytes = (din * h1 + h1 * h2 + h2 * dout_p) * itemsize
    single_buffer = resident_weight_bytes > (8 << 20)   # only matters near the residency limit

    return _fc_forward_impl(x, w1t, b1, w2t, b2, w3t, b3,
                            dim_output=dim_output,
                            batch_tile=int(batch_tile),
                            single_buffer_weights=bool(single_buffer))


# -----------------------------------------------------------------------------
# Init + pure-JAX reference
# -----------------------------------------------------------------------------
def init_fc_params(key, dim_input, dim_output, layers=(256, 256), dtype=jnp.float32):
    """Deterministic init matching torch.nn.Linear shapes: W [out, in], b [out].
    Uses U(-1/sqrt(in), 1/sqrt(in)) like PyTorch's default Linear init."""
    params = {}
    dims = [dim_input] + list(layers) + [dim_output]
    keys = jax.random.split(key, 2 * (len(dims) - 1))
    for i in range(len(dims) - 1):
        fan_in, fan_out = dims[i], dims[i + 1]
        bound = 1.0 / (fan_in ** 0.5)
        w = jax.random.uniform(keys[2 * i], (fan_out, fan_in), dtype=dtype,
                               minval=-bound, maxval=bound)
        b = jax.random.uniform(keys[2 * i + 1], (fan_out,), dtype=dtype,
                               minval=-bound, maxval=bound)
        params[f"w{i + 1}"] = w
        params[f"b{i + 1}"] = b
    return params


def fc_network_reference(x, params):
    """Pure-JAX reference of the PyTorch forward (Linear->ReLU->Linear->ReLU->Linear)."""
    h = jnp.maximum(x @ params["w1"].T + params["b1"], 0.0)
    h = jnp.maximum(h @ params["w2"].T + params["b2"], 0.0)
    return h @ params["w3"].T + params["b3"]


if __name__ == "__main__":
    key = jax.random.PRNGKey(0)
    k_param, k_x1, k_x2 = jax.random.split(key, 3)

    # Shapes consistent with FCNetwork(dim_input=32, dim_output=8, layers=[256, 256])
    dim_input = 32
    dim_output = 8
    layers = (256, 256)

    params = init_fc_params(k_param, dim_input, dim_output, layers)
    prepared = prepare_fc_params(params)               # one-time weight prep (f32 datapath)

    # Small batch: single grid step.
    x_small = jax.random.normal(k_x1, (16, dim_input), dtype=jnp.float32)
    out_small = jax.block_until_ready(fc_network_forward(x_small, prepared))
    ref_small = fc_network_reference(x_small, params)
    assert out_small.shape == (16, dim_output), out_small.shape
    assert jnp.allclose(out_small, ref_small, atol=1e-4, rtol=1e-4), "small-batch mismatch"

    # Larger batch: exercises batch padding + multi-step grid (batch_tile=512, grid=2).
    x_big = jax.random.normal(k_x2, (600, dim_input), dtype=jnp.float32)
    out_big = jax.block_until_ready(fc_network_forward(x_big, prepared))
    ref_big = fc_network_reference(x_big, params)
    assert out_big.shape == (600, dim_output), out_big.shape
    assert jnp.allclose(out_big, ref_big, atol=1e-4, rtol=1e-4), "big-batch mismatch"

    print("KERNEL_OK")
</pallas_src>

<mosaic_0001>
module attributes {stable_mosaic.version = 11 : i64} {
  func.func @_mlp_kernel(%arg0: i32, %arg1: memref<16x32xf32, #tpu.memory_space<vmem>>, %arg2: memref<32x256xf32, #tpu.memory_space<vmem>>, %arg3: memref<1x256xf32, #tpu.memory_space<vmem>>, %arg4: memref<256x256xf32, #tpu.memory_space<vmem>>, %arg5: memref<1x256xf32, #tpu.memory_space<vmem>>, %arg6: memref<256x128xf32, #tpu.memory_space<vmem>>, %arg7: memref<1x128xf32, #tpu.memory_space<vmem>>, %arg8: memref<16x128xf32, #tpu.memory_space<vmem>>) attributes {dimension_semantics = [#tpu.dimension_semantics<parallel>], iteration_bounds = array<i64: 1>, scalar_prefetch = 0 : i64, scratch_operands = 0 : i64, tpu.core_type = #tpu.core_type<tc>, window_params = [{transform_indices = @transform_0, window_bounds = array<i64: 16, 32>}, {pipeline_mode = #tpu.pipeline_mode<synchronous>, transform_indices = @transform_1, window_bounds = array<i64: 32, 256>}, {pipeline_mode = #tpu.pipeline_mode<synchronous>, transform_indices = @transform_2, window_bounds = array<i64: 1, 256>}, {pipeline_mode = #tpu.pipeline_mode<synchronous>, transform_indices = @transform_3, window_bounds = array<i64: 256, 256>}, {pipeline_mode = #tpu.pipeline_mode<synchronous>, transform_indices = @transform_4, window_bounds = array<i64: 1, 256>}, {pipeline_mode = #tpu.pipeline_mode<synchronous>, transform_indices = @transform_5, window_bounds = array<i64: 256, 128>}, {pipeline_mode = #tpu.pipeline_mode<synchronous>, transform_indices = @transform_6, window_bounds = array<i64: 1, 128>}, {transform_indices = @transform_7, window_bounds = array<i64: 16, 128>}]} {
    %c0 = arith.constant 0 : index
    %c0_0 = arith.constant 0 : index
    %0 = vector.load %arg1[%c0, %c0_0] : memref<16x32xf32, #tpu.memory_space<vmem>>, vector<16x32xf32>
    %c0_1 = arith.constant 0 : index
    %c0_2 = arith.constant 0 : index
    %1 = vector.load %arg2[%c0_1, %c0_2] : memref<32x256xf32, #tpu.memory_space<vmem>>, vector<32x256xf32>
    %cst = arith.constant dense<0.000000e+00> : vector<16x256xf32>
    %2 = tpu.matmul %0, %1, %cst {dimension_numbers = #tpu.dot_dimension_numbers<[1], [0], [0], [1], [0, 0, 1, 1], [], []>} : vector<16x32xf32>, vector<32x256xf32>, vector<16x256xf32> -> vector<16x256xf32>
    %c0_3 = arith.constant 0 : index
    %c0_4 = arith.constant 0 : index
    %3 = vector.load %arg3[%c0_3, %c0_4] : memref<1x256xf32, #tpu.memory_space<vmem>>, vector<1x256xf32>
    %4 = vector.broadcast %3 : vector<1x256xf32> to vector<16x256xf32>
    %5 = arith.addf %2, %4 : vector<16x256xf32>
    %cst_5 = arith.constant 0.000000e+00 : f32
    %6 = vector.broadcast %cst_5 : f32 to vector<16x256xf32>
    %7 = arith.maximumf %5, %6 : vector<16x256xf32>
    %c0_6 = arith.constant 0 : index
    %c0_7 = arith.constant 0 : index
    %8 = vector.load %arg4[%c0_6, %c0_7] : memref<256x256xf32, #tpu.memory_space<vmem>>, vector<256x256xf32>
    %cst_8 = arith.constant dense<0.000000e+00> : vector<16x256xf32>
    %9 = tpu.matmul %7, %8, %cst_8 {dimension_numbers = #tpu.dot_dimension_numbers<[1], [0], [0], [1], [0, 0, 1, 1], [], []>} : vector<16x256xf32>, vector<256x256xf32>, vector<16x256xf32> -> vector<16x256xf32>
    %c0_9 = arith.constant 0 : index
    %c0_10 = arith.constant 0 : index
    %10 = vector.load %arg5[%c0_9, %c0_10] : memref<1x256xf32, #tpu.memory_space<vmem>>, vector<1x256xf32>
    %11 = vector.broadcast %10 : vector<1x256xf32> to vector<16x256xf32>
    %12 = arith.addf %9, %11 : vector<16x256xf32>
    %cst_11 = arith.constant 0.000000e+00 : f32
    %13 = vector.broadcast %cst_11 : f32 to vector<16x256xf32>
    %14 = arith.maximumf %12, %13 : vector<16x256xf32>
    %c0_12 = arith.constant 0 : index
    %c0_13 = arith.constant 0 : index
    %15 = vector.load %arg6[%c0_12, %c0_13] : memref<256x128xf32, #tpu.memory_space<vmem>>, vector<256x128xf32>
    %cst_14 = arith.constant dense<0.000000e+00> : vector<16x128xf32>
    %16 = tpu.matmul %14, %15, %cst_14 {dimension_numbers = #tpu.dot_dimension_numbers<[1], [0], [0], [1], [0, 0, 1, 1], [], []>} : vector<16x256xf32>, vector<256x128xf32>, vector<16x128xf32> -> vector<16x128xf32>
    %c0_15 = arith.constant 0 : index
    %c0_16 = arith.constant 0 : index
    %17 = vector.load %arg7[%c0_15, %c0_16] : memref<1x128xf32, #tpu.memory_space<vmem>>, vector<1x128xf32>
    %18 = vector.broadcast %17 : vector<1x128xf32> to vector<16x128xf32>
    %19 = arith.addf %16, %18 : vector<16x128xf32>
    %c0_17 = arith.constant 0 : index
    %c0_18 = arith.constant 0 : index
    %20 = vector.load %arg8[%c0_17, %c0_18] : memref<16x128xf32, #tpu.memory_space<vmem>>, vector<16x128xf32>
    tpu.vector_store %arg8[%c0_17, %c0_18], %19 {strides = array<i32>} : memref<16x128xf32, #tpu.memory_space<vmem>>, vector<16x128xf32>,
    return
  }
  func.func @transform_0(%arg0: i32) -> (i32, i32) {
    %c0_i32 = arith.constant 0 : i32
    %c0_i32_0 = arith.constant 0 : i32
    return %arg0, %c0_i32 : i32, i32
  }
  func.func @transform_1(%arg0: i32) -> (i32, i32) {
    %c0_i32 = arith.constant 0 : i32
    %c0_i32_0 = arith.constant 0 : i32
    %c0_i32_1 = arith.constant 0 : i32
    return %c0_i32, %c0_i32_0 : i32, i32
  }
  func.func @transform_2(%arg0: i32) -> (i32, i32) {
    %c0_i32 = arith.constant 0 : i32
    %c0_i32_0 = arith.constant 0 : i32
    %c0_i32_1 = arith.constant 0 : i32
    return %c0_i32, %c0_i32_0 : i32, i32
  }
  func.func @transform_3(%arg0: i32) -> (i32, i32) {
    %c0_i32 = arith.constant 0 : i32
    %c0_i32_0 = arith.constant 0 : i32
    %c0_i32_1 = arith.constant 0 : i32
    return %c0_i32, %c0_i32_0 : i32, i32
  }
  func.func @transform_4(%arg0: i32) -> (i32, i32) {
    %c0_i32 = arith.constant 0 : i32
    %c0_i32_0 = arith.constant 0 : i32
    %c0_i32_1 = arith.constant 0 : i32
    return %c0_i32, %c0_i32_0 : i32, i32
  }
  func.func @transform_5(%arg0: i32) -> (i32, i32) {
    %c0_i32 = arith.constant 0 : i32
    %c0_i32_0 = arith.constant 0 : i32
    %c0_i32_1 = arith.constant 0 : i32
    return %c0_i32, %c0_i32_0 : i32, i32
  }
  func.func @transform_6(%arg0: i32) -> (i32, i32) {
    %c0_i32 = arith.constant 0 : i32
    %c0_i32_0 = arith.constant 0 : i32
    %c0_i32_1 = arith.constant 0 : i32
    return %c0_i32, %c0_i32_0 : i32, i32
  }
  func.func @transform_7(%arg0: i32) -> (i32, i32) {
    %c0_i32 = arith.constant 0 : i32
    %c0_i32_0 = arith.constant 0 : i32
    return %arg0, %c0_i32 : i32, i32
  }
}

</mosaic_0001>

<bundles_post_ra>
// kernel: _fc_forward_impl.1
= control target key start
LH: loop header
LB: loop body
LE: loop exit
PB: predicated region body
PF: predicated region fallthrough
CT: control target
= control target key end

     0   :  { %12 = vsyncpa [#allocation3], 0  ;;  %s852_s0 = inlined_call_operand.hbm [shape: f32[16,32], index: 0, kind: input, shape index: {}]   ;;  %s853_s1 = inlined_call_operand.hbm [shape: f32[32,256], index: 1, kind: input, shape index: {}]   ;;  %s854_s2 = inlined_call_operand.vmem [shape: f32[1,256], index: 2, kind: input, shape index: {}]   ;;  %s855_s3 = inlined_call_operand.hbm [shape: f32[256,256], index: 3, kind: input, shape index: {}]   ;;  %s856_s4 = inlined_call_operand.vmem [shape: f32[1,256], index: 4, kind: input, shape index: {}]   ;;  %s857_s5 = inlined_call_operand.hbm [shape: f32[256,128], index: 5, kind: input, shape index: {}]   ;;  %s858_s6 = inlined_call_operand.vmem [shape: f32[1,128], index: 6, kind: input, shape index: {}]   ;;  %s859_s7 = inlined_call_operand.vmem [shape: f32[16,128], index: 7, kind: output, shape index: {}]  }
   0x1   :  { %13 = vsyncpa [#allocation5], 0 }
   0x2   :  { %14 = vsyncpa [#allocation8], 0  ;;  %s719_s24 = smov [#allocation4]   ;;  %s625_s28 = scalar_lea.hbm %s853_s1, 1024 }
   0x3   :  { %s32_s25 = sshll.u32 %s719_s24, 4  ;;  %p626_p0 = scmp.ne.s32.totalorder %s853_s1, %s625_s28  ;;  %s33_s25 = int_to_ptr.vmem [resolvable:$true] %s32_s25 }
   0x4   :  { %p629_p1 = scmp.lt.u32.totalorder %s625_s28, %s853_s1 }
   0x6   :  { %p631_p2 = pnand %p629_p1, %p626_p0 }
   0x8   :  { %634 = shalt.err (!%p631_p2)
}
   0x9   :  { %s635_s10 = scalar_lea.vmem %s33_s25, 1024  ;;  %p640_p4 = scmp.lt.s32.totalorder %s33_s25, %s33_s25 }
   0xa   :  { %p636_p3 = scmp.ne.s32.totalorder %s33_s25, %s635_s10  ;;  %p641_p5 = scmp.lt.s32.totalorder %s635_s10, %s635_s10 }
   0xc   :  { %p642_p6 = por %p641_p5, %p640_p4 }
   0xe   :  { %p643_p7 = pnand %p642_p6, %p636_p3 }
  0x10   :  { %646 = shalt.err (!%p643_p7)
}
  0x11   :  { %s720_s11 = smov 256   ;;  %s721_s12 = smov 16  }
  0x12   :  { %38 = dma.hbm_to_vmem [thread:$0]  %s853_s1, 1024, %s33_s25, [#allocation5], %s720_s11, %s720_s11, %s721_s12  }
  0x13   :  { %s722_s15 = smov [#allocation2]   ;;  %s647_s19 = scalar_lea.hbm %s852_s0, 256 }
  0x14   :  { %s20_s16 = sshll.u32 %s722_s15, 4  ;;  %p648_p8 = scmp.ne.s32.totalorder %s852_s0, %s647_s19  ;;  %s21_s16 = int_to_ptr.vmem [resolvable:$true] %s20_s16 }
  0x15   :  { %p651_p9 = scmp.lt.u32.totalorder %s647_s19, %s852_s0 }
  0x17   :  { %p653_p10 = pnand %p651_p9, %p648_p8 }
  0x19   :  { %656 = shalt.err (!%p653_p10)
}
  0x1a   :  { %s657_s24 = scalar_lea.vmem %s21_s16, 256  ;;  %p662_p12 = scmp.lt.s32.totalorder %s21_s16, %s21_s16 }
  0x1b   :  { %p658_p11 = scmp.ne.s32.totalorder %s21_s16, %s657_s24  ;;  %p663_p13 = scmp.lt.s32.totalorder %s657_s24, %s657_s24 }
  0x1d   :  { %p664_p0 = por %p663_p13, %p662_p12 }
  0x1f   :  { %p665_p1 = pnand %p664_p0, %p658_p11 }
  0x21   :  { %668 = shalt.err (!%p665_p1)
}
  0x22   :  { %s723_s1 = smov 128   ;;  %s724_s25 = smov 8  }
  0x23   :  { %26 = dma.hbm_to_vmem [thread:$0]  %s852_s0, 256, %s21_s16, [#allocation3], %s723_s1, %s723_s1, %s724_s25  }
  0x24   :  { %s725_s28 = smov [#allocation6]   ;;  %s726_s30 = smov [#allocation7]  }
  0x25   :  { %s46_s29 = sshll.u32 %s725_s28, 4  ;;  %s60_s8 = sshll.u32 %s726_s30, 4  ;;  %s47_s29 = int_to_ptr.vmem [resolvable:$true] %s46_s29  ;;  %s798_s8 = int_to_ptr.vmem [resolvable:$true] %s60_s8 }
  0x26   :  { %s669_s13 = scalar_lea.hbm %s855_s3, 8192 }
  0x27   :  { %p670_p2 = scmp.ne.s32.totalorder %s855_s3, %s669_s13  ;;  %p673_p3 = scmp.lt.u32.totalorder %s669_s13, %s855_s3 }
  0x29   :  { %p675_p4 = pnand %p673_p3, %p670_p2 }
  0x2b   :  { %678 = shalt.err (!%p675_p4)
}
  0x2c   :  { %s679_s0 = scalar_lea.vmem %s47_s29, 8192  ;;  %p684_p6 = scmp.lt.s32.totalorder %s47_s29, %s47_s29 }
  0x2d   :  { %p680_p5 = scmp.ne.s32.totalorder %s47_s29, %s679_s0  ;;  %p685_p7 = scmp.lt.s32.totalorder %s679_s0, %s679_s0 }
  0x2f   :  { %p686_p8 = por %p685_p7, %p684_p6 }
  0x31   :  { %p687_p9 = pnand %p686_p8, %p680_p5 }
  0x33   :  { %690 = shalt.err (!%p687_p9)
}
  0x34   :  { %52 = dma.hbm_to_vmem [thread:$0]  %s855_s3, 8192, %s47_s29, [#allocation5], %s720_s11, %s720_s11, %s721_s12  }
  0x35   :  { %s691_s22 = scalar_lea.hbm %s857_s5, 4096 }
  0x36   :  { %p692_p10 = scmp.ne.s32.totalorder %s857_s5, %s691_s22  ;;  %p695_p11 = scmp.lt.u32.totalorder %s691_s22, %s857_s5 }
  0x38   :  { %p697_p12 = pnand %p695_p11, %p692_p10 }
  0x3a   :  { %700 = shalt.err (!%p697_p12)
}
  0x3b   :  { %s701_s28 = scalar_lea.vmem %s798_s8, 4096  ;;  %p706_p0 = scmp.lt.s32.totalorder %s798_s8, %s798_s8 }
  0x3c   :  { %p702_p13 = scmp.ne.s32.totalorder %s798_s8, %s701_s28  ;;  %p707_p1 = scmp.lt.s32.totalorder %s701_s28, %s701_s28 }
  0x3e   :  { %p708_p2 = por %p707_p1, %p706_p0 }
  0x40   :  { %p709_p3 = pnand %p708_p2, %p702_p13 }
  0x42   :  { %712 = shalt.err (!%p709_p3)
}
  0x43   :  { %66 = dma.hbm_to_vmem [thread:$0]  %s857_s5, 4096, %s798_s8, [#allocation8], %s723_s1, %s723_s1, %s724_s25  }
  0x44   :  { %713 = dma.done.wait [#allocation3], 256  }
  0x45   :  { %714 = vsyncadd [#allocation3], 4294967040 }
  0x46   :  { %715 = dma.done.wait [#allocation5], 9216  }
  0x47   :  { %716 = vsyncadd [#allocation5], 4294958080 }
  0x48   :  { %717 = dma.done.wait [#allocation8], 4096  }
  0x49   :  { %718 = vsyncadd [#allocation8], 4294963200  ;;  %v727_v0 = vmov 0.0   ;;  %v84_v1 = vld [vmem:[#allocation4 + $0x8] sm:$0xff]  ;;  %v86_v2 = vld [vmem:[#allocation4 + $0x18] sm:$0xff]  ;;  %vm103_vm0 = vcmask 261120  }
  0x4a   :  { %174 = vmatprep.mubr.f32.mxu0 %v727_v0  ;;  %v83_v3 = vld [vmem:[#allocation4] sm:$0xff]  ;;  %v512_v4 = vpack.c.bf16 %v86_v2, %v84_v1  ;;  %v85_v5 = vld [vmem:[#allocation4 + $0x10] sm:$0xff]  ;;  %v88_v6 = vld [vmem:[#allocation4 + $0x28] sm:$0xff] }
  0x4b   :  { %v90_v7 = vld [vmem:[#allocation4 + $0x38] sm:$0xff]  ;;  %v514_v8 = vpack.c.bf16 %v85_v5, %v83_v3  ;;  %v87_v10 = vld [vmem:[#allocation4 + $0x20] sm:$0xff]  ;;  %v89_v11 = vld [vmem:[#allocation4 + $0x30] sm:$0xff] }
  0x4c   :  { %v516_v9 = vpack.c.bf16 %v90_v7, %v88_v6  ;;  %513 = vmatprep.subr.bf16.mxu0 %v512_v4  ;;  %v192_v12 = vld [vmem:[#allocation6 + $0x8] sm:$0xff]  ;;  %v194_v13 = vld [vmem:[#allocation6 + $0x18] sm:$0xff]  ;;  %v518_v14 = vpack.c.bf16 %v89_v11, %v87_v10  ;;  %v191_v16 = vld [vmem:[#allocation6] sm:$0xff] }
  0x4d   :  { %515 = vmatpush1.bf16.msra.mxu0 %v514_v8  ;;  %v520_v15 = vpack.c.bf16 %v194_v13, %v192_v12  ;;  %v193_v17 = vld [vmem:[#allocation6 + $0x10] sm:$0xff]  ;;  %v196_v18 = vld [vmem:[#allocation6 + $0x28] sm:$0xff]  ;;  %v198_v20 = vld [vmem:[#allocation6 + $0x38] sm:$0xff] }
  0x4e   :  { %517 = vmatprep.subr.bf16.mxu0 %v516_v9  ;;  %v522_v19 = vpack.c.bf16 %v193_v17, %v191_v16  ;;  %v195_v21 = vld [vmem:[#allocation6 + $0x20] sm:$0xff]  ;;  %v197_v22 = vld [vmem:[#allocation6 + $0x30] sm:$0xff]  ;;  %v524_v23 = vpack.c.bf16 %v198_v20, %v196_v18  ;;  %v200_v24 = vld [vmem:[#allocation6 + $0x48] sm:$0xff] }
  0x4f   :  { %521 = vmatprep.subr.bf16.mxu1 %v520_v15  ;;  %v202_v25 = vld [vmem:[#allocation6 + $0x58] sm:$0xff]  ;;  %v526_v26 = vpack.c.bf16 %v197_v22, %v195_v21  ;;  %v81_v27 = vld [vmem:[#allocation2] sm:$0xff]  ;;  %v199_v29 = vld [vmem:[#allocation6 + $0x40] sm:$0xff] }
  0x50   :  { %523 = vmatpush1.bf16.msra.mxu1 %v522_v19  ;;  %v528_v28 = vpack.c.bf16 %v202_v25, %v200_v24  ;;  %v201_v30 = vld [vmem:[#allocation6 + $0x50] sm:$0xff]  ;;  %v204_v31 = vld [vmem:[#allocation6 + $0x68] sm:$0xff]  ;;  %v206_v32 = vld [vmem:[#allocation6 + $0x78] sm:$0xff] }
  0x51   :  { %519 = vmatpush1.bf16.msra.mxu0 %v518_v14  ;;  %525 = vmatprep.subr.bf16.mxu1 %v524_v23  ;;  %v530_v33 = vpack.c.bf16 %v201_v30, %v199_v29  ;;  %v82_v34 = vld [vmem:[#allocation2 + $0x8] sm:$0xff]  ;;  %v532_v35 = vpack.c.bf16 %v206_v32, %v204_v31  ;;  %v203_v36 = vld [vmem:[#allocation6 + $0x60] sm:$0xff]  ;;  %v205_v37 = vld [vmem:[#allocation6 + $0x70] sm:$0xff] }
  0x52   :  { %v208_v38 = vld [vmem:[#allocation6 + $0x88] sm:$0xff]  ;;  %v210_v39 = vld [vmem:[#allocation6 + $0x98] sm:$0xff]  ;;  %v534_v40 = vpack.c.bf16 %v205_v37, %v203_v36  ;;  %v207_v42 = vld [vmem:[#allocation6 + $0x80] sm:$0xff] }
  0x53   :  { %v536_v41 = vpack.c.bf16 %v210_v39, %v208_v38  ;;  %v209_v43 = vld [vmem:[#allocation6 + $0x90] sm:$0xff]  ;;  %v212_v44 = vld [vmem:[#allocation6 + $0xa8] sm:$0xff]  ;;  %v214_v45 = vld [vmem:[#allocation6 + $0xb8] sm:$0xff] }
  0x54   :  { %471 = vmatmul.mubr.msk.f32.vlgmr.msra.gmra.mrb[0].mxu0 %vm103_vm0, %v81_v27  ;;  %527 = vmatpush1.bf16.msra.mxu1 %v526_v26  ;;  %v538_v46 = vpack.c.bf16 %v209_v43, %v207_v42  ;;  %v540_v47 = vpack.c.bf16 %v214_v45, %v212_v44  ;;  %v211_v48 = vld [vmem:[#allocation6 + $0xa0] sm:$0xff]  ;;  %v213_v49 = vld [vmem:[#allocation6 + $0xb0] sm:$0xff]  ;;  %v216_v50 = vld [vmem:[#allocation6 + $0xc8] sm:$0xff] }
  0x55   :  { %180 = vmatprep.mubr.f32.mxu0 %v727_v0  ;;  %529 = vmatprep.subr.bf16.mxu1 %v528_v28  ;;  %v218_v51 = vld [vmem:[#allocation6 + $0xd8] sm:$0xff]  ;;  %v542_v52 = vpack.c.bf16 %v213_v49, %v211_v48  ;;  %v215_v54 = vld [vmem:[#allocation6 + $0xc0] sm:$0xff]  ;;  %v217_v55 = vld [vmem:[#allocation6 + $0xd0] sm:$0xff] }
  0x56   :  { %v544_v53 = vpack.c.bf16 %v218_v51, %v216_v50  ;;  %v220_v56 = vld [vmem:[#allocation6 + $0xe8] sm:$0xff]  ;;  %v222_v57 = vld [vmem:[#allocation6 + $0xf8] sm:$0xff]  ;;  %v546_v58 = vpack.c.bf16 %v217_v55, %v215_v54  ;;  %v219_v60 = vld [vmem:[#allocation6 + $0xe0] sm:$0xff] }
  0x57   :  { %v548_v59 = vpack.c.bf16 %v222_v57, %v220_v56  ;;  %v221_v61 = vld [vmem:[#allocation6 + $0xf0] sm:$0xff]  ;;  %v224_v62 = vld [vmem:[#allocation6 + $0x108] sm:$0xff]  ;;  %v226_v63 = vld [vmem:[#allocation6 + $0x118] sm:$0xff] }
  0x58   :  { %472 = vmatmul.mubr.msk.f32.gmra.mrb[2].mxu0 %vm103_vm0, %v82_v34  ;;  %531 = vmatpush1.bf16.msra.mxu1 %v530_v33  ;;  %v550_v0 = vpack.c.bf16 %v221_v61, %v219_v60  ;;  %v552_v1 = vpack.c.bf16 %v226_v63, %v224_v62  ;;  %v223_v2 = vld [vmem:[#allocation6 + $0x100] sm:$0xff]  ;;  %v225_v3 = vld [vmem:[#allocation6 + $0x110] sm:$0xff]  ;;  %v228_v4 = vld [vmem:[#allocation6 + $0x128] sm:$0xff] }
  0x59   :  { %533 = vmatprep.subr.bf16.mxu1 %v532_v35  ;;  %v230_v5 = vld [vmem:[#allocation6 + $0x138] sm:$0xff]  ;;  %v554_v6 = vpack.c.bf16 %v225_v3, %v223_v2  ;;  %v227_v8 = vld [vmem:[#allocation6 + $0x120] sm:$0xff]  ;;  %v229_v9 = vld [vmem:[#allocation6 + $0x130] sm:$0xff] }
  0x5a   :  { %v556_v7 = vpack.c.bf16 %v230_v5, %v228_v4  ;;  %v232_v10 = vld [vmem:[#allocation6 + $0x148] sm:$0xff]  ;;  %v234_v11 = vld [vmem:[#allocation6 + $0x158] sm:$0xff]  ;;  %v558_v12 = vpack.c.bf16 %v229_v9, %v227_v8  ;;  %v231_v14 = vld [vmem:[#allocation6 + $0x140] sm:$0xff] }
  0x5b   :  { %v560_v13 = vpack.c.bf16 %v234_v11, %v232_v10  ;;  %v233_v15 = vld [vmem:[#allocation6 + $0x150] sm:$0xff]  ;;  %v236_v16 = vld [vmem:[#allocation6 + $0x168] sm:$0xff]  ;;  %v238_v17 = vld [vmem:[#allocation6 + $0x178] sm:$0xff] }
  0x5c   :  { %535 = vmatpush1.bf16.msra.mxu1 %v534_v40  ;;  %v562_v18 = vpack.c.bf16 %v233_v15, %v231_v14  ;;  %v564_v19 = vpack.c.bf16 %v238_v17, %v236_v16  ;;  %v235_v20 = vld [vmem:[#allocation6 + $0x160] sm:$0xff]  ;;  %v237_v21 = vld [vmem:[#allocation6 + $0x170] sm:$0xff]  ;;  %v240_v22 = vld [vmem:[#allocation6 + $0x188] sm:$0xff] }
  0x5d   :  { %537 = vmatprep.subr.bf16.mxu1 %v536_v41  ;;  %v242_v23 = vld [vmem:[#allocation6 + $0x198] sm:$0xff]  ;;  %v566_v24 = vpack.c.bf16 %v237_v21, %v235_v20  ;;  %v239_v26 = vld [vmem:[#allocation6 + $0x180] sm:$0xff]  ;;  %v241_v27 = vld [vmem:[#allocation6 + $0x190] sm:$0xff] }
  0x5e   :  { %v568_v25 = vpack.c.bf16 %v242_v23, %v240_v22  ;;  %v244_v28 = vld [vmem:[#allocation6 + $0x1a8] sm:$0xff]  ;;  %v246_v29 = vld [vmem:[#allocation6 + $0x1b8] sm:$0xff]  ;;  %v570_v30 = vpack.c.bf16 %v241_v27, %v239_v26  ;;  %v243_v32 = vld [vmem:[#allocation6 + $0x1a0] sm:$0xff]  ;;  %v93_v22 = vlaneseq }
  0x5f   :  { %v572_v31 = vpack.c.bf16 %v246_v29, %v244_v28  ;;  %v245_v33 = vld [vmem:[#allocation6 + $0x1b0] sm:$0xff]  ;;  %v248_v34 = vld [vmem:[#allocation6 + $0x1c8] sm:$0xff]  ;;  %v250_v35 = vld [vmem:[#allocation6 + $0x1d8] sm:$0xff] }
  0x60   :  { %539 = vmatpush1.bf16.msra.mxu1 %v538_v46  ;;  %v574_v36 = vpack.c.bf16 %v245_v33, %v243_v32  ;;  %v576_v37 = vpack.c.bf16 %v250_v35, %v248_v34  ;;  %v247_v38 = vld [vmem:[#allocation6 + $0x1c0] sm:$0xff]  ;;  %v249_v39 = vld [vmem:[#allocation6 + $0x1d0] sm:$0xff]  ;;  %v252_v41 = vld [vmem:[#allocation6 + $0x1e8] sm:$0xff]  ;;  %v94_v23 = vshrl.u32 %v93_v22, 7 }
  0x61   :  { %541 = vmatprep.subr.bf16.mxu1 %v540_v47  ;;  %v578_v40 = vpack.c.bf16 %v249_v39, %v247_v38  ;;  %v254_v42 = vld [vmem:[#allocation6 + $0x1f8] sm:$0xff]  ;;  %v251_v44 = vld [vmem:[#allocation6 + $0x1e0] sm:$0xff]  ;;  %v253_v45 = vld [vmem:[#allocation6 + $0x1f0] sm:$0xff] }
  0x62   :  { %v580_v43 = vpack.c.bf16 %v254_v42, %v252_v41  ;;  %v582_v46 = vpack.c.bf16 %v253_v45, %v251_v44  ;;  %v364_v47 = vld [vmem:[#allocation7 + $0x80] sm:$0xff]  ;;  %v365_v48 = vld [vmem:[#allocation7 + $0x88] sm:$0xff]  ;;  %v350_v56 = vld [vmem:[#allocation7 + $0x10] sm:$0xff]  ;;  %v99_v26 = vsub.s32 1, %v94_v23 }
  0x63   :  { %v348_v49 = vld [vmem:[#allocation7] sm:$0xff]  ;;  %v584_v50 = vpack.c.bf16 %v365_v48, %v364_v47  ;;  %v349_v51 = vld [vmem:[#allocation7 + $0x8] sm:$0xff]  ;;  %v351_v57 = vld [vmem:[#allocation7 + $0x18] sm:$0xff] }
  0x64   :  { %543 = vmatpush1.bf16.msra.mxu1 %v542_v52  ;;  %v366_v52 = vld [vmem:[#allocation7 + $0x90] sm:$0xff]  ;;  %v586_v54 = vpack.c.bf16 %v349_v51, %v348_v49  ;;  %v590_v60 = vpack.c.bf16 %v351_v57, %v350_v56  ;;  %v352_v62 = vld [vmem:[#allocation7 + $0x20] sm:$0xff]  ;;  %v353_v63 = vld [vmem:[#allocation7 + $0x28] sm:$0xff] }
  0x65   :  { %545 = vmatprep.subr.bf16.mxu1 %v544_v53  ;;  %v367_v53 = vld [vmem:[#allocation7 + $0x98] sm:$0xff]  ;;  %585 = vmatprep.subr.bf16.mxu0 %v584_v50  ;;  %v594_v2 = vpack.c.bf16 %v353_v63, %v352_v62  ;;  %v354_v4 = vld [vmem:[#allocation7 + $0x30] sm:$0xff]  ;;  %v356_v10 = vld [vmem:[#allocation7 + $0x40] sm:$0xff] }
  0x66   :  { %v588_v55 = vpack.c.bf16 %v367_v53, %v366_v52  ;;  %587 = vmatpush3.bf16.msra.mxu0 %v586_v54  ;;  %v355_v5 = vld [vmem:[#allocation7 + $0x38] sm:$0xff]  ;;  %v357_v11 = vld [vmem:[#allocation7 + $0x48] sm:$0xff]  ;;  %v358_v16 = vld [vmem:[#allocation7 + $0x50] sm:$0xff] }
  0x67   :  { %v598_v8 = vpack.c.bf16 %v355_v5, %v354_v4  ;;  %v602_v14 = vpack.c.bf16 %v357_v11, %v356_v10  ;;  %v359_v17 = vld [vmem:[#allocation7 + $0x58] sm:$0xff]  ;;  %v360_v41 = vld [vmem:[#allocation7 + $0x60] sm:$0xff]  ;;  %v361_v42 = vld [vmem:[#allocation7 + $0x68] sm:$0xff] }
  0x68   :  { %547 = vmatpush1.bf16.msra.mxu1 %v546_v58  ;;  %v368_v58 = vld [vmem:[#allocation7 + $0xa0] sm:$0xff]  ;;  %589 = vmatprep.subr.bf16.mxu0 %v588_v55  ;;  %v606_v20 = vpack.c.bf16 %v359_v17, %v358_v16  ;;  %v378_v44 = vld [vmem:[#allocation7 + $0xf0] sm:$0xff]  ;;  %v379_v45 = vld [vmem:[#allocation7 + $0xf8] sm:$0xff] }
  0x69   :  { %549 = vmatprep.subr.bf16.mxu1 %v548_v59  ;;  %v369_v59 = vld [vmem:[#allocation7 + $0xa8] sm:$0xff]  ;;  %v362_v47 = vld [vmem:[#allocation7 + $0x70] sm:$0xff]  ;;  %v363_v48 = vld [vmem:[#allocation7 + $0x78] sm:$0xff] }
  0x6a   :  { %v592_v61 = vpack.c.bf16 %v369_v59, %v368_v58  ;;  %591 = vmatpush3.bf16.msra.mxu0 %v590_v60  ;;  %v614_v49 = vpack.c.bf16 %v363_v48, %v362_v47  ;;  %v255_v50 = vld [vmem:[%s856_s4] sm:$0x3] }
  0x6b   :  { %v264_v52 = vrot.slane %v255_v50, %v99_v26 }
  0x6c   :  { %551 = vmatpush1.bf16.msra.mxu1 %v550_v0  ;;  %v370_v0 = vld [vmem:[#allocation7 + $0xb0] sm:$0xff]  ;;  %593 = vmatprep.subr.bf16.mxu0 %v592_v61 }
  0x6d   :  { %553 = vmatprep.subr.bf16.mxu1 %v552_v1  ;;  %v371_v1 = vld [vmem:[#allocation7 + $0xb8] sm:$0xff] }
  0x6e   :  { %v596_v3 = vpack.c.bf16 %v371_v1, %v370_v0  ;;  %595 = vmatpush3.bf16.msra.mxu0 %v594_v2  ;;  %v473_v2 = vld [vmem:[%s858_s6] ss:$0 sm:$0xff] }
  0x70   :  { %555 = vmatpush1.bf16.msra.mxu1 %v554_v6  ;;  %v372_v6 = vld [vmem:[#allocation7 + $0xc0] sm:$0xff]  ;;  %597 = vmatprep.subr.bf16.mxu0 %v596_v3 }
  0x71   :  { %557 = vmatprep.subr.bf16.mxu1 %v556_v7  ;;  %v373_v7 = vld [vmem:[#allocation7 + $0xc8] sm:$0xff] }
  0x72   :  { %v600_v9 = vpack.c.bf16 %v373_v7, %v372_v6  ;;  %599 = vmatpush3.bf16.msra.mxu0 %v598_v8 }
  0x74   :  { %559 = vmatpush1.bf16.msra.mxu1 %v558_v12  ;;  %v374_v12 = vld [vmem:[#allocation7 + $0xd0] sm:$0xff]  ;;  %601 = vmatprep.subr.bf16.mxu0 %v600_v9 }
  0x75   :  { %561 = vmatprep.subr.bf16.mxu1 %v560_v13  ;;  %v375_v13 = vld [vmem:[#allocation7 + $0xd8] sm:$0xff] }
  0x76   :  { %v604_v15 = vpack.c.bf16 %v375_v13, %v374_v12  ;;  %603 = vmatpush3.bf16.msra.mxu0 %v602_v14 }
  0x78   :  { %563 = vmatpush1.bf16.msra.mxu1 %v562_v18  ;;  %v376_v18 = vld [vmem:[#allocation7 + $0xe0] sm:$0xff]  ;;  %605 = vmatprep.subr.bf16.mxu0 %v604_v15 }
  0x79   :  { %565 = vmatprep.subr.bf16.mxu1 %v564_v19  ;;  %v377_v19 = vld [vmem:[#allocation7 + $0xe8] sm:$0xff] }
  0x7a   :  { %v608_v21 = vpack.c.bf16 %v377_v19, %v376_v18  ;;  %607 = vmatpush3.bf16.msra.mxu0 %v606_v20 }
  0x7c   :  { %567 = vmatpush1.bf16.msra.mxu1 %v566_v24  ;;  %609 = vmatprep.subr.bf16.mxu0 %v608_v21  ;;  %v95_v24 = vsub.s32 0, %v94_v23 }
  0x7d   :  { %569 = vmatprep.subr.bf16.mxu1 %v568_v25  ;;  %v91_v25 = vld [vmem:[%s854_s2] sm:$0x3] }
  0x7e   :  { %v96_v27 = vrot.slane %v91_v25, %v95_v24  ;;  %v100_v28 = vrot.slane %v91_v25, %v99_v26  ;;  %v260_v51 = vrot.slane %v255_v50, %v95_v24 }
  0x80   :  { %571 = vmatpush1.bf16.msra.mxu1 %v570_v30 }
  0x81   :  { %573 = vmatprep.subr.bf16.mxu1 %v572_v31 }
  0x84   :  { %575 = vmatpush1.bf16.msra.mxu1 %v574_v36 }
  0x85   :  { %577 = vmatprep.subr.bf16.mxu1 %v576_v37 }
  0x88   :  { %579 = vmatpush1.bf16.msra.mxu1 %v578_v40 }
  0x89   :  { %581 = vmatprep.subr.bf16.mxu1 %v580_v43  ;;  %v610_v43 = vpack.c.bf16 %v361_v42, %v360_v41 }
  0x8b   :  { %611 = vmatpush3.bf16.msra.mxu0 %v610_v43 }
  0x8c   :  { %583 = vmatpush1.bf16.msra.mxu1 %v582_v46  ;;  %v612_v46 = vpack.c.bf16 %v379_v45, %v378_v44 }
  0x8e   :  { %613 = vmatprep.subr.bf16.mxu0 %v612_v46 }
  0x8f   :  { %615 = vmatpush3.bf16.msra.mxu0 %v614_v49 }
 0x127   :  { %v176_v29 = vpop.f32.mrb[0].mxu0 }
 0x128   :  { %v177_v30 = vadd.f32 %v176_v29, %v96_v27  ;;  %v178_v31 = vpop.f32.mrb[1].mxu0 }
 0x129   :  { %v179_v32 = vadd.f32 %v178_v31, %v100_v28 }
 0x12a   :  { %v187_v35 = vmax.f32 %v177_v30, 0.0 }
 0x12b   :  { %v182_v33 = vpop.f32.mrb[2].mxu0  ;;  %v188_v34 = vmax.f32 %v179_v32, 0.0 }
 0x12c   :  { %v183_v36 = vadd.f32 %v182_v33, %v96_v27  ;;  %v184_v37 = vpop.f32.mrb[3].mxu0 }
 0x12d   :  { %v185_v38 = vadd.f32 %v184_v37, %v100_v28  ;;  %331 = vmatprep.mubr.f32.mxu1 %v188_v34 }
 0x12e   :  { %332 = vmatmul.mubr.f32.vlgmr.msra.gmra.mrb[0].mxu1 %v187_v35  ;;  %v189_v40 = vmax.f32 %v183_v36, 0.0 }
 0x12f   :  { %v190_v39 = vmax.f32 %v185_v38, 0.0 }
 0x131   :  { %337 = vmatprep.mubr.f32.mxu1 %v190_v39 }
 0x132   :  { %338 = vmatmul.mubr.f32.gmra.mrb[2].mxu1 %v189_v40 }
 0x201   :  { %v333_v53 = vpop.f32.mrb[0].mxu1 }
 0x202   :  { %v334_v54 = vadd.f32 %v333_v53, %v260_v51  ;;  %v335_v55 = vpop.f32.mrb[1].mxu1 }
 0x203   :  { %v336_v56 = vadd.f32 %v335_v55, %v264_v52 }
 0x204   :  { %v344_v59 = vmax.f32 %v334_v54, 0.0 }
 0x205   :  { %v345_v57 = vmax.f32 %v336_v56, 0.0  ;;  %v339_v58 = vpop.f32.mrb[2].mxu1 }
 0x206   :  { %v340_v60 = vadd.f32 %v339_v58, %v260_v51  ;;  %v341_v61 = vpop.f32.mrb[3].mxu1 }
 0x207   :  { %v342_v62 = vadd.f32 %v341_v61, %v264_v52  ;;  %451 = vmatprep.mubr.f32.mxu0 %v345_v57 }
 0x208   :  { %452 = vmatmul.mubr.f32.vlgmr.msra.gmra.mrb[4].mxu0 %v344_v59  ;;  %v346_v0 = vmax.f32 %v340_v60, 0.0 }
 0x209   :  { %v347_v63 = vmax.f32 %v342_v62, 0.0 }
 0x20b   :  { %456 = vmatprep.mubr.f32.mxu0 %v347_v63 }
 0x20c   :  { %457 = vmatmul.mubr.f32.gmra.mrb[6].mxu0 %v346_v0 }
 0x2db   :  { %v506_v1 = vpop.f32.mrb[4].mxu0 }
 0x2dc   :  { %v507_v3 = vpop.f32.mrb[5].mxu0 }
 0x2dd   :  { %v508_v4 = vadd.f32 %v507_v3, %v506_v1 }
 0x2df   :  { %v454_v5 = vadd.f32 %v508_v4, %v473_v2  ;;  %v509_v6 = vpop.f32.mrb[6].mxu0 }
 0x2e0   :  { %v510_v7 = vpop.f32.mrb[7].mxu0 }
 0x2e1   :  { %462 = vst [vmem:[%s859_s7] sm:$0xff] %v454_v5  ;;  %v511_v8 = vadd.f32 %v510_v7, %v509_v6 }
 0x2e3   :  { %v459_v9 = vadd.f32 %v511_v8, %v473_v2 }
 0x2e5   :  { %463 = vst [vmem:[%s859_s7 + $0x8] sm:$0xff] %v459_v9 }
 0x2e6   :  { %468 = vsyncpa [#allocation3], 1 }
 0x2e7   :  { %469 = vsyncpa [#allocation5], 1 }
 0x2e8   :  { %470 = vsyncpa [#allocation8], 1 }

</bundles_post_ra>
